<compile_context>
chip_gen: v7x
topology: tpu7x:2x2x1
jax: 0.10.0
libtpu: 0.0.40
codegen_flags: <defaults>
</compile_context>

<pallas_src>
import functools

import jax
import jax.numpy as jnp
from jax.experimental import pallas as pl
from jax.experimental.pallas import tpu as pltpu

_CHUNK = 8  # sublane-aligned spatial-reduction slab


def _net_head_kernel(feat_ref, w_ref, b_ref, out_ref, acc_ref, *,
                     inv_s, s_total, tile_s):
    # feat_ref: (tile_n, tile_s, C) bf16    w_ref: (C, Kp) bf16
    # b_ref:    (1, Kp) f32                 out_ref: (tile_n, Kp) f32
    # acc_ref:  (tile_n, C) f32 scratch (pooled-sum accumulator across S steps)
    i_s = pl.program_id(1)

    @pl.when(i_s == 0)
    def _init():
        acc_ref[...] = jnp.zeros_like(acc_ref)

    need_mask = (s_total % tile_s) != 0          # static (ragged final S block)
    s_base = i_s * tile_s

    def slab_sum(s0, size, acc):
        # Upcast only an (tile_n, size, C) slab -- never the whole block.
        slab = feat_ref[:, pl.ds(s0, size), :]
        if need_mask:
            row = jax.lax.broadcasted_iota(jnp.int32, (1, size, 1), 1)
            slab = jnp.where(row + s_base + s0 < s_total, slab,
                             jnp.zeros_like(slab))
        return acc + jnp.sum(slab.astype(jnp.float32), axis=1)

    n_full = tile_s // _CHUNK
    rem = tile_s - n_full * _CHUNK

    acc = acc_ref[...]
    if n_full > 0:
        def body(k, a):
            return slab_sum(pl.multiple_of(k * _CHUNK, _CHUNK), _CHUNK, a)
        acc = jax.lax.fori_loop(0, n_full, body, acc, unroll=min(n_full, 4))
    if rem > 0:
        acc = slab_sum(n_full * _CHUNK, rem, acc)
    acc_ref[...] = acc

    @pl.when(i_s == pl.num_programs(1) - 1)
    def _finish():
        pooled = (acc_ref[...] * inv_s).astype(jnp.bfloat16)     # (tile_n, C)
        logits = jnp.dot(pooled, w_ref[...],
                         preferred_element_type=jnp.float32)     # MXU bf16 path
        out_ref[...] = logits + b_ref[...]


def _vmem_plan():
    """(double-buffered feature budget bytes, vmem_limit_bytes or None)."""
    mib = 1024 * 1024
    kind = ""
    try:
        kind = jax.devices()[0].device_kind.lower()
    except Exception:
        pass
    vmem_cap = None
    try:
        vmem_cap = int(pltpu.get_tpu_info().vmem_capacity_bytes)
    except Exception:
        pass
    if "v5e" in kind or "v5 lite" in kind or "v5lite" in kind:
        return 10 * mib, None            # v5e: keep 16 MiB default scoped limit
    if "v6" in kind:                     # v6e: 128 MiB physical VMEM
        return 48 * mib, 80 * mib
    if "v7" in kind or "7x" in kind or (vmem_cap is not None and vmem_cap <= 64 * mib):
        return 24 * mib, 44 * mib        # v7x: 64 MiB physical, keep headroom
    return 10 * mib, None                # unknown generation: conservative


def _choose_tiles(n, s, c, feat_bytes, feat_budget):
    # Batch tile: 8-aligned (or the full small batch); guarantee >= 2 batch
    # grid steps when N allows so v7x's two TensorCores both get work.
    if n <= 8:
        tile_n = n
    else:
        tile_n = min(64, (n // 8) * 8)
        if n >= 16:
            tile_n = min(tile_n, max(8, ((n // 2) // 8) * 8))
    # Spatial tile: fill the per-block budget (budget covers both DMA buffers);
    # force >= 2 S steps when the batch axis has a single step so the pipeline
    # still overlaps DMA with compute.
    row_bytes = c * feat_bytes
    max_rows = max(_CHUNK, (feat_budget // 2) // max(1, tile_n * row_bytes))
    tile_s = s if max_rows >= s else max(_CHUNK, (max_rows // _CHUNK) * _CHUNK)
    if tile_s == s and pl.cdiv(n, tile_n) == 1 and s >= 2 * _CHUNK:
        tile_s = max(_CHUNK, ((s // 2) // _CHUNK) * _CHUNK)
    return tile_n, tile_s


@functools.partial(jax.jit, static_argnames=("num_classes",))
def net_forward(feat_nhwc, w_pt, b_pt, *, num_classes):
    """Head of `Net.forward`.

    feat_nhwc : (N, H, W, 1280) channels-last backbone features (bf16 or f32).
    w_pt      : (num_classes, 1280)  -- PyTorch nn.Linear weight layout.
    b_pt      : (num_classes,)
    returns   : (N, num_classes) float32 logits.
    """
    n, h, w, c = feat_nhwc.shape
    s = h * w
    feat_nsc = feat_nhwc.reshape(n, s, c)                    # free: no transpose

    k = num_classes
    kp = ((k + 127) // 128) * 128                            # lane-dense output width
    w_t = jnp.zeros((c, kp), jnp.bfloat16).at[:, :k].set(
        jnp.transpose(w_pt).astype(jnp.bfloat16))
    b_pad = jnp.zeros((1, kp), jnp.float32).at[:, :k].set(
        b_pt.astype(jnp.float32).reshape(1, k))

    feat_budget, vmem_limit = _vmem_plan()
    tile_n, tile_s = _choose_tiles(n, s, c, feat_nsc.dtype.itemsize, feat_budget)
    grid = (pl.cdiv(n, tile_n), pl.cdiv(s, tile_s))

    cost = pl.CostEstimate(
        flops=2 * n * c * kp + n * s * c,
        transcendentals=0,
        bytes_accessed=(feat_nsc.size * feat_nsc.dtype.itemsize
                        + w_t.size * w_t.dtype.itemsize
                        + b_pad.size * 4 + n * kp * 4),
    )

    cp_kwargs = dict(dimension_semantics=("parallel", "arbitrary"))
    if vmem_limit is not None:
        cp_kwargs["vmem_limit_bytes"] = vmem_limit

    kernel = functools.partial(_net_head_kernel,
                               inv_s=1.0 / s, s_total=s, tile_s=tile_s)

    out = pl.pallas_call(
        kernel,
        out_shape=jax.ShapeDtypeStruct((n, kp), jnp.float32),
        grid_spec=pltpu.PrefetchScalarGridSpec(
            num_scalar_prefetch=0,
            grid=grid,
            in_specs=[
                pl.BlockSpec((tile_n, tile_s, c), lambda i, j: (i, j, 0)),
                pl.BlockSpec((c, kp), lambda i, j: (0, 0)),   # weights: resident
                pl.BlockSpec((1, kp), lambda i, j: (0, 0)),   # bias:    resident
            ],
            out_specs=pl.BlockSpec((tile_n, kp), lambda i, j: (i, 0)),
            scratch_shapes=[pltpu.VMEM((tile_n, c), jnp.float32)],
        ),
        compiler_params=pltpu.CompilerParams(**cp_kwargs),
        cost_estimate=cost,
    )(feat_nsc, w_t, b_pad)

    return out[:, :k]


if __name__ == "__main__":
    num_classes = 4
    N, H, W, C = 2, 4, 4, 1280     # C fixed at 1280 by EfficientNet-B0; small demo spatial

    key = jax.random.PRNGKey(0)
    k_feat, k_w, k_b = jax.random.split(key, 3)

    # Synthetic channels-last feature map standing in for the backbone output,
    # carried in bf16 (the bandwidth-bound head's dominant HBM read).
    feat = jax.random.normal(k_feat, (N, H, W, C), dtype=jnp.float32).astype(jnp.bfloat16)

    # Deterministic init of nn.Linear(1280, num_classes) parameters (PyTorch layout).
    w_pt = jax.random.normal(k_w, (num_classes, C), dtype=jnp.float32) * 0.02
    b_pt = jax.random.normal(k_b, (num_classes,), dtype=jnp.float32) * 0.02

    out = net_forward(feat, w_pt, b_pt, num_classes=num_classes)
    out = jax.block_until_ready(out)

    # Pure-JAX reference of the same head math (correctness guard).
    feat_f32 = feat.astype(jnp.float32)
    ref = jnp.mean(feat_f32, axis=(1, 2)) @ jnp.transpose(w_pt) + b_pt[None, :]
    assert out.shape == (N, num_classes)
    assert jnp.allclose(out, ref, atol=1e-2, rtol=1e-2)

    print("KERNEL_OK")
</pallas_src>

<mosaic_0001>
module attributes {stable_mosaic.version = 11 : i64} {
  func.func @_net_head_kernel(%arg0: i32, %arg1: i32, %arg2: memref<2x8x1280xbf16, #tpu.memory_space<vmem>>, %arg3: memref<1280x128xbf16, #tpu.memory_space<vmem>>, %arg4: memref<1x128xf32, #tpu.memory_space<vmem>>, %arg5: memref<2x128xf32, #tpu.memory_space<vmem>>, %arg6: memref<2x1280xf32, #tpu.memory_space<vmem>>) attributes {dimension_semantics = [#tpu.dimension_semantics<parallel>, #tpu.dimension_semantics<arbitrary>], iteration_bounds = array<i64: 1, 2>, scalar_prefetch = 0 : i64, scratch_operands = 1 : i64, tpu.core_type = #tpu.core_type<tc>, window_params = [{transform_indices = @transform_0, window_bounds = array<i64: 2, 8, 1280>}, {pipeline_mode = #tpu.pipeline_mode<synchronous>, transform_indices = @transform_1, window_bounds = array<i64: 1280, 128>}, {pipeline_mode = #tpu.pipeline_mode<synchronous>, transform_indices = @transform_2, window_bounds = array<i64: 1, 128>}, {transform_indices = @transform_3, window_bounds = array<i64: 2, 128>}]} {
    %c0_i32 = arith.constant 0 : i32
    %0 = arith.cmpi eq, %arg1, %c0_i32 : i32
    %1 = arith.extui %0 : i1 to i32
    %c0_i32_0 = arith.constant 0 : i32
    %2 = arith.cmpi ne, %1, %c0_i32_0 : i32
    scf.if %2 {
      %cst_9 = arith.constant 0.000000e+00 : f32
      %15 = vector.broadcast %cst_9 : f32 to vector<2x1280xf32>
      %c0_10 = arith.constant 0 : index
      %c0_11 = arith.constant 0 : index
      %16 = vector.load %arg6[%c0_10, %c0_11] : memref<2x1280xf32, #tpu.memory_space<vmem>>, vector<2x1280xf32>
      tpu.vector_store %arg6[%c0_10, %c0_11], %15 {strides = array<i32>} : memref<2x1280xf32, #tpu.memory_space<vmem>>, vector<2x1280xf32>,
    } else {
    }
    %c0 = arith.constant 0 : index
    %c0_1 = arith.constant 0 : index
    %3 = vector.load %arg6[%c0, %c0_1] : memref<2x1280xf32, #tpu.memory_space<vmem>>, vector<2x1280xf32>
    %c0_i32_2 = arith.constant 0 : i32
    %c8_i32 = arith.constant 8 : i32
    %4 = arith.muli %c0_i32_2, %c8_i32 : i32
    %5 = tpu.assume_multiple %4, 8 : i32
    %c0_3 = arith.constant 0 : index
    %6 = arith.index_cast %5 : i32 to index
    %c0_4 = arith.constant 0 : index
    %7 = vector.load %arg2[%c0_3, %6, %c0_4] : memref<2x8x1280xbf16, #tpu.memory_space<vmem>>, vector<2x8x1280xbf16>
    %8 = arith.extf %7 : vector<2x8x1280xbf16> to vector<2x8x1280xf32>
    %cst = arith.constant dense<0.000000e+00> : vector<2x1280xf32>
    %9 = vector.multi_reduction <add>, %8, %cst [1] : vector<2x8x1280xf32> to vector<2x1280xf32>
    %10 = arith.addf %3, %9 : vector<2x1280xf32>
    %c1_i32 = arith.constant 1 : i32
    %c0_5 = arith.constant 0 : index
    %c0_6 = arith.constant 0 : index
    %11 = vector.load %arg6[%c0_5, %c0_6] : memref<2x1280xf32, #tpu.memory_space<vmem>>, vector<2x1280xf32>
    tpu.vector_store %arg6[%c0_5, %c0_6], %10 {strides = array<i32>} : memref<2x1280xf32, #tpu.memory_space<vmem>>, vector<2x1280xf32>,
    %c1_i32_7 = arith.constant 1 : i32
    %12 = arith.cmpi eq, %arg1, %c1_i32_7 : i32
    %13 = arith.extui %12 : i1 to i32
    %c0_i32_8 = arith.constant 0 : i32
    %14 = arith.cmpi ne, %13, %c0_i32_8 : i32
    scf.if %14 {
      %c0_9 = arith.constant 0 : index
      %c0_10 = arith.constant 0 : index
      %15 = vector.load %arg6[%c0_9, %c0_10] : memref<2x1280xf32, #tpu.memory_space<vmem>>, vector<2x1280xf32>
      %cst_11 = arith.constant 6.250000e-02 : f32
      %16 = vector.broadcast %cst_11 : f32 to vector<2x1280xf32>
      %17 = arith.mulf %15, %16 : vector<2x1280xf32>
      %18 = arith.truncf %17 : vector<2x1280xf32> to vector<2x1280xbf16>
      %c0_12 = arith.constant 0 : index
      %c0_13 = arith.constant 0 : index
      %19 = vector.load %arg3[%c0_12, %c0_13] : memref<1280x128xbf16, #tpu.memory_space<vmem>>, vector<1280x128xbf16>
      %cst_14 = arith.constant dense<0.000000e+00> : vector<2x128xf32>
      %20 = tpu.matmul %18, %19, %cst_14 {dimension_numbers = #tpu.dot_dimension_numbers<[1], [0], [0], [1], [0, 0, 1, 1], [], []>} : vector<2x1280xbf16>, vector<1280x128xbf16>, vector<2x128xf32> -> vector<2x128xf32>
      %c0_15 = arith.constant 0 : index
      %c0_16 = arith.constant 0 : index
      %21 = vector.load %arg4[%c0_15, %c0_16] : memref<1x128xf32, #tpu.memory_space<vmem>>, vector<1x128xf32>
      %22 = vector.broadcast %21 : vector<1x128xf32> to vector<2x128xf32>
      %23 = arith.addf %20, %22 : vector<2x128xf32>
      %c0_17 = arith.constant 0 : index
      %c0_18 = arith.constant 0 : index
      %24 = vector.load %arg5[%c0_17, %c0_18] : memref<2x128xf32, #tpu.memory_space<vmem>>, vector<2x128xf32>
      tpu.vector_store %arg5[%c0_17, %c0_18], %23 {strides = array<i32>} : memref<2x128xf32, #tpu.memory_space<vmem>>, vector<2x128xf32>,
    } else {
    }
    return
  }
  func.func @transform_0(%arg0: i32, %arg1: i32) -> (i32, i32, i32) {
    %c0_i32 = arith.constant 0 : i32
    %c0_i32_0 = arith.constant 0 : i32
    return %arg0, %arg1, %c0_i32 : i32, i32, i32
  }
  func.func @transform_1(%arg0: i32, %arg1: i32) -> (i32, i32) {
    %c0_i32 = arith.constant 0 : i32
    %c0_i32_0 = arith.constant 0 : i32
    %c0_i32_1 = arith.constant 0 : i32
    return %c0_i32, %c0_i32_0 : i32, i32
  }
  func.func @transform_2(%arg0: i32, %arg1: i32) -> (i32, i32) {
    %c0_i32 = arith.constant 0 : i32
    %c0_i32_0 = arith.constant 0 : i32
    %c0_i32_1 = arith.constant 0 : i32
    return %c0_i32, %c0_i32_0 : i32, i32
  }
  func.func @transform_3(%arg0: i32, %arg1: i32) -> (i32, i32) {
    %c0_i32 = arith.constant 0 : i32
    %c0_i32_0 = arith.constant 0 : i32
    return %arg0, %c0_i32 : i32, i32
  }
}

</mosaic_0001>

<bundles_post_ra>
// kernel: net_forward.1
= control target key start
LH: loop header
LB: loop body
LE: loop exit
PB: predicated region body
PF: predicated region fallthrough
CT: control target
= control target key end

     0   :  { %8 = vsyncpa [#allocation5], 0  ;;  %s1940_s12 = smov 0   ;;  %s1942_s13 = smov 0   ;;  %s2386_s0 = inlined_call_operand.vmem [shape: bf16[2,16,1280], index: 0, kind: input, shape index: {}]   ;;  %s2387_s1 = inlined_call_operand.vmem [shape: bf16[1280,128], index: 1, kind: input, shape index: {}]   ;;  %s2388_s2 = inlined_call_operand.vmem [shape: f32[1,128], index: 2, kind: input, shape index: {}]   ;;  %s2389_s3 = inlined_call_operand.hbm [shape: f32[2,128], index: 3, kind: output, shape index: {}]  }
   0x1   :  { %s1944_s14 = smov 0   ;;  %s1946_s15 = smov 0  }
   0x2   :  { %s1948_s16 = smov 0  }
   0x3 LB: > { %s1513_s17 = sadd.s32 4294967295, %s1915_s16   ;;  %s23_s18 = sadd.s32 1, %s1911_s15  ;;  %s1915_s16 = sphi %s1948_s16, %s14_s16   ;;  %s1911_s15 = sphi %s1946_s15, %s2394_s15   ;;  %s1907_s14 = sphi %s1944_s14, %s2393_s14   ;;  %s1903_s13 = sphi %s1942_s13, %s2392_s13   ;;  %s1899_s12 = sphi %s1940_s12, %s2391_s12  }
   0x4   : > { %p24_p0 = scmp.ge.s32.totalorder %s23_s18, 2  ;;  %p42_p1 = scmp.ne.s32.totalorder %s1903_s13, %s1899_s12 }
   0x5   : > { %p43_p2 = scmp.eq.s32.totalorder %s1915_s16, 0  ;;  %s35_s20 = sadd.s32 1, %s1903_s13 }
   0x6   : > { %s2396_s18 = smov (%p24_p0, %s23_s18), 0  ;;  %p1515_p5 = scmp.ge.s32.totalorder %s1915_s16, 2 }
   0x7   : > { %p44_p3 = por %p43_p2, %p42_p1  ;;  %s31_s19 = ssub.s32 %s1911_s15, %s2396_s18 }
   0x8   : > { %p33_p4 = scmp.eq.s32.totalorder %s31_s19, 0  ;;  %142 = sbr.rel (%p1515_p5) target bundleno = 25 (0x19), region = 24 }
   0xa   : > { %s1976_s21 = scalar_select %p33_p4, %s1903_s13, %s35_s20  }
   0xf   : > { %145 = sbr.rel (!%p44_p3) target bundleno = 25 (0x19), region = 28  ;;  %s147_s22 = sand.u32 (%p44_p3), 1, %s1903_s13  }
  0x10   : > { %s1716_s23 = smul.u32 (%p44_p3), 40, %s1911_s15 }
  0x11   : > { %s1715_s24 = smul.u32 (%p44_p3), 80, %s147_s22 }
  0x12   : > { %s155_s27 = scalar_lea.vmem (%p44_p3), %s2386_s0, %s1716_s23 }
  0x13   : > { %v168_v0 = vld [vmem:[%s155_s27] sm:$0xff] (%p44_p3)  ;;  %v170_v1 = vld [vmem:[%s155_s27 + $0x8] sm:$0xff] (%p44_p3)  ;;  %v172_v2 = vld [vmem:[%s155_s27 + $0x10] sm:$0xff] (%p44_p3)  ;;  %s149_s28 = scalar_lea.vmem (%p44_p3), [#allocation3], %s1715_s24 }
  0x14   : > { %169 = vst [vmem:[%s149_s28] sm:$0xff] (%p44_p3), %v168_v0  ;;  %171 = vst [vmem:[%s149_s28 + $0x8] sm:$0xff] (%p44_p3), %v170_v1  ;;  %v174_v3 = vld [vmem:[%s155_s27 + $0x18] sm:$0xff] (%p44_p3)  ;;  %v176_v4 = vld [vmem:[%s155_s27 + $0x20] sm:$0xff] (%p44_p3) }
  0x15   : > { %173 = vst [vmem:[%s149_s28 + $0x10] sm:$0xff] (%p44_p3), %v172_v2  ;;  %v178_v5 = vld [vmem:[%s155_s27 + $0x50] sm:$0xff] (%p44_p3)  ;;  %175 = vst [vmem:[%s149_s28 + $0x18] sm:$0xff] (%p44_p3), %v174_v3  ;;  %v180_v6 = vld [vmem:[%s155_s27 + $0x58] sm:$0xff] (%p44_p3) }
  0x16   : > { %177 = vst [vmem:[%s149_s28 + $0x20] sm:$0xff] %v176_v4  ;;  %179 = vst [vmem:[%s149_s28 + $0x28] sm:$0xff] %v178_v5  ;;  %v182_v7 = vld [vmem:[%s155_s27 + $0x60] sm:$0xff]  ;;  %v184_v8 = vld [vmem:[%s155_s27 + $0x68] sm:$0xff] }
  0x17   : > { %181 = vst [vmem:[%s149_s28 + $0x30] sm:$0xff] %v180_v6  ;;  %183 = vst [vmem:[%s149_s28 + $0x38] sm:$0xff] %v182_v7  ;;  %v186_v9 = vld [vmem:[%s155_s27 + $0x70] sm:$0xff] }
  0x18   : > { %185 = vst [vmem:[%s149_s28 + $0x40] sm:$0xff] %v184_v8  ;;  %187 = vst [vmem:[%s149_s28 + $0x48] sm:$0xff] %v186_v9 }
  0x19 PF: > { %p1517_p6 = scmp.ge.s32.totalorder %s1915_s16, 1  ;;  %p192_p7 = scmp.lt.s32.totalorder %s1915_s16, 3 }
  0x1b   : > { %p193_p8 = pnand %p1517_p6, %p192_p7 }
  0x1c   : > { %s199_s29 = sand.u32 (!%p193_p8), 1, %s1899_s12   ;;  %p1518_p9 = scmp.ne.s32.totalorder (!%p193_p8), %s1907_s14, 0 }
  0x1d   : > { %196 = sbr.rel (%p193_p8) target bundleno = 421 (0x1a5), region = 51 }
  0x1e   : > { %s1717_s30 = smul.u32 (!%p193_p8), 80, %s199_s29 }
  0x20   : > { %s1987_s4 = scalar_lea.vmem (!%p193_p8), [#allocation3], %s1717_s30 }
  0x24   : > { %222 = sbr.rel (%p1518_p9) target bundleno = 43 (0x2b), region = 59  ;;  %v1917_v10 = vmov (!%p1518_p9), 0.0  }
  0x25   : > { %223 = vst [vmem:[#allocation2] sm:$0xff] (!%p1518_p9), %v1917_v10  ;;  %224 = vst [vmem:[#allocation2 + $0x8] sm:$0xff] (!%p1518_p9), %v1917_v10 }
  0x26   : > { %225 = vst [vmem:[#allocation2 + $0x10] sm:$0xf] (!%p1518_p9), %v1917_v10 }
  0x2b PF: > { %v232_v11 = vld [vmem:[%s1987_s4] sm:$0xff]  ;;  %v233_v12 = vld [vmem:[%s1987_s4 + $0x8] sm:$0xff]  ;;  %v234_v13 = vld [vmem:[%s1987_s4 + $0x10] sm:$0xff]  ;;  %v1918_v28 = vmov 1983009808   ;;  %v407_v30 = vlaneseq  ;;  %vm491_vm0 = vcmask 1041409  }
  0x2c   : > { %v235_v14 = vld [vmem:[%s1987_s4 + $0x18] sm:$0xff]  ;;  %v1995_v15 = vld [vmem:[%s1987_s4 + $0x20] sm:$0xff]  ;;  %v1998_v16 = vld [vmem:[%s1987_s4 + $0x28] sm:$0xff]  ;;  %v242_v18 = vunpack.c.l.bf16 %v232_v11  ;;  %v243_v19 = vunpack.c.h.bf16 %v232_v11  ;;  %v244_v20 = vunpack.c.l.bf16 %v233_v12  ;;  %v245_v21 = vunpack.c.h.bf16 %v233_v12  ;;  %p1519_p10 = scmp.ne.s32.totalorder %s1907_s14, 1 }
  0x2d   : > { %v2001_v17 = vld [vmem:[%s1987_s4 + $0x30] sm:$0xff]  ;;  %v246_v22 = vunpack.c.l.bf16 %v234_v13  ;;  %v247_v23 = vunpack.c.h.bf16 %v234_v13  ;;  %v248_v24 = vunpack.c.l.bf16 %v235_v14  ;;  %v249_v25 = vunpack.c.h.bf16 %v235_v14  ;;  %v239_v55 = vld [vmem:[%s1987_s4 + $0x38] sm:$0xff]  ;;  %v2013_v60 = vld [vmem:[%s1987_s4 + $0x40] sm:$0xff] }
  0x2e   : > { %v250_v26 = vunpack.c.l.bf16 %v1995_v15  ;;  %v251_v27 = vunpack.c.h.bf16 %v1995_v15  ;;  %v2005_v29 = vunpack.c.l.s4 %v1918_v28  ;;  %v252_v31 = vunpack.c.l.bf16 %v1998_v16  ;;  %v2016_v61 = vld [vmem:[%s1987_s4 + $0x48] sm:$0xff] }
  0x2f   : > { %v253_v32 = vunpack.c.h.bf16 %v1998_v16  ;;  %v254_v33 = vunpack.c.l.bf16 %v2001_v17  ;;  %v255_v34 = vunpack.c.h.bf16 %v2001_v17  ;;  %v262_v35 = vrot.slane %v242_v18, 4 }
  0x30   : > { %v268_v36 = vrot.slane %v243_v19, 4  ;;  %v274_v37 = vrot.slane %v244_v20, 4  ;;  %v280_v38 = vrot.slane %v245_v21, 4  ;;  %v286_v39 = vrot.slane %v246_v22, 4 }
  0x31   : > { %v292_v40 = vrot.slane %v247_v23, 4  ;;  %v298_v41 = vrot.slane %v248_v24, 4  ;;  %v304_v42 = vrot.slane %v249_v25, 4  ;;  %v263_v43 = vadd.f32 %v262_v35, %v242_v18 }
  0x32   : > { %v269_v44 = vadd.f32 %v268_v36, %v243_v19  ;;  %v275_v45 = vadd.f32 %v274_v37, %v244_v20  ;;  %v281_v46 = vadd.f32 %v280_v38, %v245_v21  ;;  %v287_v47 = vadd.f32 %v286_v39, %v246_v22 }
  0x33   : > { %v293_v48 = vadd.f32 %v292_v40, %v247_v23  ;;  %v299_v49 = vadd.f32 %v298_v41, %v248_v24  ;;  %v305_v50 = vadd.f32 %v304_v42, %v249_v25  ;;  %v264_v51 = vrot.slane %v263_v43, 2 }
  0x34   : > { %v270_v52 = vrot.slane %v269_v44, 2  ;;  %v276_v53 = vrot.slane %v275_v45, 2  ;;  %v282_v54 = vrot.slane %v281_v46, 2  ;;  %v288_v56 = vrot.slane %v287_v47, 2 }
  0x35   : > { %v294_v57 = vrot.slane %v293_v48, 2  ;;  %v300_v58 = vrot.slane %v299_v49, 2  ;;  %v306_v59 = vrot.slane %v305_v50, 2  ;;  %v265_v62 = vadd.f32 %v264_v51, %v263_v43 }
  0x36   : > { %v271_v63 = vadd.f32 %v270_v52, %v269_v44  ;;  %v277_v0 = vadd.f32 %v276_v53, %v275_v45  ;;  %v283_v1 = vadd.f32 %v282_v54, %v281_v46  ;;  %v289_v2 = vadd.f32 %v288_v56, %v287_v47 }
  0x37   : > { %v295_v3 = vadd.f32 %v294_v57, %v293_v48  ;;  %v301_v4 = vadd.f32 %v300_v58, %v299_v49  ;;  %v307_v5 = vadd.f32 %v306_v59, %v305_v50  ;;  %v256_v6 = vunpack.c.l.bf16 %v239_v55 }
  0x38   : > { %v257_v7 = vunpack.c.h.bf16 %v239_v55  ;;  %v266_v8 = vrot.slane %v265_v62, 1  ;;  %v272_v9 = vrot.slane %v271_v63, 1  ;;  %v258_v10 = vunpack.c.l.bf16 %v2013_v60 }
  0x39   : > { %v259_v11 = vunpack.c.h.bf16 %v2013_v60  ;;  %v260_v12 = vunpack.c.l.bf16 %v2016_v61  ;;  %v261_v13 = vunpack.c.h.bf16 %v2016_v61  ;;  %v278_v14 = vrot.slane %v277_v0, 1 }
  0x3a   : > { %v284_v18 = vrot.slane %v283_v1, 1  ;;  %v290_v19 = vrot.slane %v289_v2, 1  ;;  %v296_v20 = vrot.slane %v295_v3, 1  ;;  %v2022_v21 = vadd.f32 %v266_v8, %v265_v62 }
  0x3b   : > { %v2024_v22 = vadd.f32 %v272_v9, %v271_v63  ;;  %v302_v23 = vrot.slane %v301_v4, 1  ;;  %v308_v24 = vrot.slane %v307_v5, 1  ;;  %v310_v25 = vrot.slane %v250_v26, 4 }
  0x3c   : > { %v316_v28 = vrot.slane %v251_v27, 4  ;;  %v322_v35 = vrot.slane %v252_v31, 4  ;;  %v328_v36 = vrot.slane %v253_v32, 4  ;;  %v334_v37 = vrot.slane %v254_v33, 4 }
  0x3d   : > { %v340_v38 = vrot.slane %v255_v34, 4  ;;  %v346_v39 = vrot.slane %v256_v6, 4  ;;  %v352_v40 = vrot.slane %v257_v7, 4  ;;  %v311_v41 = vadd.f32 %v310_v25, %v250_v26 }
  0x3e   : > { %v317_v42 = vadd.f32 %v316_v28, %v251_v27  ;;  %v323_v43 = vadd.f32 %v322_v35, %v252_v31  ;;  %v329_v44 = vadd.f32 %v328_v36, %v253_v32  ;;  %v335_v45 = vadd.f32 %v334_v37, %v254_v33 }
  0x3f   : > { %v341_v46 = vadd.f32 %v340_v38, %v255_v34  ;;  %v347_v47 = vadd.f32 %v346_v39, %v256_v6  ;;  %v353_v48 = vadd.f32 %v352_v40, %v257_v7  ;;  %v312_v49 = vrot.slane %v311_v41, 2 }
  0x40   : > { %v318_v50 = vrot.slane %v317_v42, 2  ;;  %v324_v26 = vrot.slane %v323_v43, 2  ;;  %v330_v51 = vrot.slane %v329_v44, 2  ;;  %v336_v15 = vrot.slane %v335_v45, 2 }
  0x41   : > { %v342_v27 = vrot.slane %v341_v46, 2  ;;  %v348_v52 = vrot.slane %v347_v47, 2  ;;  %v354_v53 = vrot.slane %v353_v48, 2  ;;  %v313_v31 = vadd.f32 %v312_v49, %v311_v41 }
  0x42   : > { %v319_v54 = vadd.f32 %v318_v50, %v317_v42  ;;  %v325_v16 = vadd.f32 %v324_v26, %v323_v43  ;;  %v331_v32 = vadd.f32 %v330_v51, %v329_v44  ;;  %v337_v55 = vadd.f32 %v336_v15, %v335_v45 }
  0x43   : > { %v343_v56 = vadd.f32 %v342_v27, %v341_v46  ;;  %v349_v33 = vadd.f32 %v348_v52, %v347_v47  ;;  %v355_v57 = vadd.f32 %v354_v53, %v353_v48  ;;  %v279_v17 = vadd.f32 %v278_v14, %v277_v0 }
  0x44   : > { %v285_v34 = vadd.f32 %v284_v18, %v283_v1  ;;  %v314_v58 = vrot.slane %v313_v31, 1  ;;  %v320_v59 = vrot.slane %v319_v54, 1  ;;  %v291_v62 = vadd.f32 %v290_v19, %v289_v2 }
  0x45   : > { %v297_v63 = vadd.f32 %v296_v20, %v295_v3  ;;  %v326_v6 = vrot.slane %v325_v16, 1  ;;  %v332_v7 = vrot.slane %v331_v32, 1  ;;  %v303_v8 = vadd.f32 %v302_v23, %v301_v4 }
  0x46   : > { %v309_v9 = vadd.f32 %v308_v24, %v307_v5  ;;  %v338_v25 = vrot.slane %v337_v55, 1  ;;  %v344_v28 = vrot.slane %v343_v56, 1  ;;  %v315_v35 = vadd.f32 %v314_v58, %v313_v31 }
  0x47   : > { %v321_v36 = vadd.f32 %v320_v59, %v319_v54  ;;  %v350_v37 = vrot.slane %v349_v33, 1  ;;  %v356_v38 = vrot.slane %v355_v57, 1  ;;  %v358_v39 = vrot.slane %v258_v10, 4 }
  0x48   : > { %v364_v0 = vrot.slane %v259_v11, 4  ;;  %v370_v1 = vrot.slane %v260_v12, 4  ;;  %v376_v2 = vrot.slane %v261_v13, 4  ;;  %v327_v3 = vadd.f32 %v326_v6, %v325_v16 }
  0x49   : > { %v333_v4 = vadd.f32 %v332_v7, %v331_v32  ;;  %v406_v5 = vunpack.c.0.s8 %v2005_v29  ;;  %v408_v14 = vshrl.u32 %v407_v30, 7  ;;  %v359_v18 = vadd.f32 %v358_v39, %v258_v10  ;;  %v228_v39 = vld [vmem:[#allocation2 + $0x10] sm:$0xf] }
  0x4a   : > { %v365_v19 = vadd.f32 %v364_v0, %v259_v11  ;;  %v371_v20 = vadd.f32 %v370_v1, %v260_v12  ;;  %v377_v23 = vadd.f32 %v376_v2, %v261_v13  ;;  %v339_v24 = vadd.f32 %v338_v25, %v337_v55 }
  0x4b   : > { %v345_v40 = vadd.f32 %v344_v28, %v343_v56  ;;  %v351_v41 = vadd.f32 %v350_v37, %v349_v33  ;;  %v402_v29 = vcombine.low %v2022_v21, %v2024_v22  ;;  %v360_v42 = vrot.slane %v359_v18, 2 }
  0x4c   : > { %v366_v30 = vrot.slane %v365_v19, 2  ;;  %v372_v43 = vrot.slane %v371_v20, 2  ;;  %v378_v44 = vrot.slane %v377_v23, 2  ;;  %v357_v10 = vadd.f32 %v356_v38, %v355_v57 }
  0x4d   : > { %v403_v45 = vcombine.low %v279_v17, %v285_v34  ;;  %v2070_v60 = vsub.s32 %v406_v5, %v408_v14  ;;  %v419_v11 = vcombine.low %v291_v62, %v297_v63  ;;  %v361_v46 = vadd.f32 %v360_v42, %v359_v18  ;;  %v227_v5 = vld [vmem:[#allocation2 + $0x8] sm:$0xff]  ;;  %v1769_v42 = vld [vmem:[%s2387_s1 + $0xc0] sm:$0xff] (!%p1519_p10)  }
  0x4e   : > { %v367_v12 = vadd.f32 %v366_v30, %v365_v19  ;;  %v373_v47 = vadd.f32 %v372_v43, %v371_v20  ;;  %v379_v61 = vadd.f32 %v378_v44, %v377_v23  ;;  %v420_v48 = vcombine.low %v303_v8, %v309_v9  ;;  %v1770_v30 = vld [vmem:[%s2387_s1 + $0x80] sm:$0xff] (!%p1519_p10)   ;;  %1627 = vmatprep.subr.bf16.mxu1 (!%p1519_p10), %v1769_v42  ;;  %v1771_v43 = vld [vmem:[%s2387_s1 + $0x48] sm:$0xff] (!%p1519_p10)  }
  0x4f   : > { %v410_v13 = vrot.slane %v402_v29, %v2070_v60  ;;  %v436_v49 = vcombine.low %v315_v35, %v321_v36  ;;  %v444_v50 = vcombine.low %v327_v3, %v333_v4  ;;  %v362_v26 = vrot.slane %v361_v46, 1  ;;  %v226_v35 = vld [vmem:[#allocation2] sm:$0xff]  ;;  %1628 = vmatpush3.bf16.msra.mxu1 (!%p1519_p10), %v1770_v30  ;;  %v1772_v44 = vld [vmem:[%s2387_s1 + $0x8] sm:$0xff] (!%p1519_p10)   ;;  %v1823_v30 = vld [vmem:[%s2387_s1 + $0x170] sm:$0xff] (!%p1519_p10)  }
  0x50   : > { %v368_v21 = vrot.slane %v367_v12, 1  ;;  %v374_v22 = vrot.slane %v373_v47, 1  ;;  %v380_v51 = vrot.slane %v379_v61, 1  ;;  %v417_v15 = vrot.slane %v403_v45, %v2070_v60  ;;  %v1768_v29 = vld [vmem:[%s2387_s1] sm:$0xff] (!%p1519_p10)   ;;  %v1774_v45 = vld [vmem:[%s2387_s1 + $0x88] sm:$0xff] (!%p1519_p10)  }
  0x51   : > { %v445_v27 = vcombine.low %v339_v24, %v345_v40  ;;  %v452_v52 = vrot.slane %v444_v50, %v2070_v60  ;;  %v461_v53 = vcombine.low %v351_v41, %v357_v10  ;;  %v363_v31 = vadd.f32 %v362_v26, %v361_v46  ;;  %v1767_v41 = vld [vmem:[%s2387_s1 + $0x40] sm:$0xff] (!%p1519_p10)   ;;  %v1773_v10 = vld [vmem:[%s2387_s1 + $0xc8] sm:$0xff] (!%p1519_p10)   ;;  %v1776_v46 = vld [vmem:[%s2387_s1 + $0x10] sm:$0xff] (!%p1519_p10)  }
  0x52   : > { %v369_v54 = vadd.f32 %v368_v21, %v367_v12  ;;  %v375_v16 = vadd.f32 %v374_v22, %v373_v47  ;;  %v381_v32 = vadd.f32 %v380_v51, %v379_v61  ;;  %v427_v55 = vrot.slane %v419_v11, %v2070_v60  ;;  %1605 = vmatprep.subr.bf16.mxu0 (!%p1519_p10), %v1767_v41  ;;  %v1775_v11 = vld [vmem:[%s2387_s1 + $0x50] sm:$0xff] (!%p1519_p10)   ;;  %v1779_v61 = vld [vmem:[%s2387_s1 + $0x58] sm:$0xff] (!%p1519_p10)   ;;  %v1783_v50 = vld [vmem:[%s2387_s1 + $0x60] sm:$0xff] (!%p1519_p10)  }
  0x53   : > { %v459_v56 = vrot.slane %v445_v27, %v2070_v60  ;;  %v434_v33 = vrot.slane %v420_v48, %v2070_v60  ;;  %v469_v17 = vrot.slane %v461_v53, %v2070_v60  ;;  %v418_v58 = vcombine.low %v410_v13, %v417_v15  ;;  %1606 = vmatpush3.bf16.msra.mxu0 (!%p1519_p10), %v1768_v29  ;;  %v1777_v12 = vld [vmem:[%s2387_s1 + $0xd0] sm:$0xff] (!%p1519_p10)   ;;  %v1780_v13 = vld [vmem:[%s2387_s1 + $0x18] sm:$0xff] (!%p1519_p10)   ;;  %v1784_v26 = vld [vmem:[%s2387_s1 + $0x20] sm:$0xff] (!%p1519_p10)  }
  0x54   : > { %v462_v57 = vcombine.low %v363_v31, %v369_v54  ;;  %v478_v34 = vcombine.low %v375_v16, %v381_v32  ;;  %v443_v62 = vrot.slane %v436_v49, %v2070_v60  ;;  %vm493_vm1 = vcmask 1043459   ;;  %1607 = vmatprep.subr.bf16.mxu0 (!%p1519_p10), %v1771_v43  ;;  %1629 = vmatprep.subr.bf16.mxu1 (!%p1519_p10), %v1773_v10  ;;  %v1778_v47 = vld [vmem:[%s2387_s1 + $0x90] sm:$0xff] (!%p1519_p10)   ;;  %v1781_v48 = vld [vmem:[%s2387_s1 + $0xd8] sm:$0xff] (!%p1519_p10)   ;;  %v1785_v21 = vld [vmem:[%s2387_s1 + $0xe0] sm:$0xff] (!%p1519_p10)  }
  0x55   : > { %v460_v59 = vcombine.low %v452_v52, %v459_v56  ;;  %v435_v8 = vcombine.low %v427_v55, %v434_v33  ;;  %vm495_vm2 = vcmask 1045509   ;;  %vm497_vm3 = vcmask 1047559   ;;  %1630 = vmatpush3.bf16.msra.mxu1 (!%p1519_p10), %v1774_v45  ;;  %v1782_v49 = vld [vmem:[%s2387_s1 + $0x98] sm:$0xff] (!%p1519_p10)   ;;  %v1786_v22 = vld [vmem:[%s2387_s1 + $0xa0] sm:$0xff] (!%p1519_p10)   ;;  %v1787_v51 = vld [vmem:[%s2387_s1 + $0x68] sm:$0xff] (!%p1519_p10)  }
  0x56   : > { %v476_v63 = vrot.slane %v462_v57, %v2070_v60  ;;  %v485_v6 = vrot.slane %v478_v34, %v2070_v60  ;;  %1631 = vmatprep.subr.bf16.mxu1 (!%p1519_p10), %v1777_v12  ;;  %v1788_v15 = vld [vmem:[%s2387_s1 + $0x28] sm:$0xff] (!%p1519_p10)   ;;  %v1791_v53 = vld [vmem:[%s2387_s1 + $0x70] sm:$0xff] (!%p1519_p10)   ;;  %v1795_v32 = vld [vmem:[%s2387_s1 + $0x78] sm:$0xff] (!%p1519_p10)  }
  0x57   : > { %v490_v7 = vrot.slane %v460_v59, 7  ;;  %1608 = vmatpush3.bf16.msra.mxu0 (!%p1519_p10), %v1772_v44  ;;  %v1789_v27 = vld [vmem:[%s2387_s1 + $0xe8] sm:$0xff] (!%p1519_p10)   ;;  %v1792_v31 = vld [vmem:[%s2387_s1 + $0x30] sm:$0xff] (!%p1519_p10)   ;;  %v1796_v55 = vld [vmem:[%s2387_s1 + $0x38] sm:$0xff] (!%p1519_p10)  }
  0x58   : > { %v477_v9 = vcombine.low %v469_v17, %v476_v63  ;;  %v508_v25 = vrot.slane %v485_v6, 7  ;;  %1609 = vmatprep.subr.bf16.mxu0 (!%p1519_p10), %v1775_v11  ;;  %v1790_v52 = vld [vmem:[%s2387_s1 + $0xa8] sm:$0xff] (!%p1519_p10)   ;;  %v1793_v54 = vld [vmem:[%s2387_s1 + $0xf0] sm:$0xff] (!%p1519_p10)   ;;  %v1797_v56 = vld [vmem:[%s2387_s1 + $0xf8] sm:$0xff] (!%p1519_p10)  }
  0x59   : > { %v492_v28 = vsel %vm491_vm0, %v490_v7, %v418_v58  ;;  %1632 = vmatpush3.bf16.msra.mxu1 (!%p1519_p10), %v1778_v47  ;;  %v1794_v16 = vld [vmem:[%s2387_s1 + $0xb0] sm:$0xff] (!%p1519_p10)   ;;  %v1798_v17 = vld [vmem:[%s2387_s1 + $0xb8] sm:$0xff] (!%p1519_p10)   ;;  %v1799_v34 = vld [vmem:[%s2387_s1 + $0x140] sm:$0xff] (!%p1519_p10)  }
  0x5a   : > { %v494_v36 = vsel %vm493_vm1, %v490_v7, %v492_v28  ;;  %v501_v37 = vrot.slane %v477_v9, 7  ;;  %v509_v38 = vsel %vm491_vm0, %v508_v25, %v443_v62  ;;  %1633 = vmatprep.subr.bf16.mxu1 (!%p1519_p10), %v1781_v48  ;;  %v1801_v62 = vld [vmem:[%s2387_s1 + $0x1c0] sm:$0xff] (!%p1519_p10)   ;;  %v1821_v29 = vld [vmem:[%s2387_s1 + $0x1e8] sm:$0xff] (!%p1519_p10)   ;;  %v1825_v44 = vld [vmem:[%s2387_s1 + $0x1f0] sm:$0xff] (!%p1519_p10)  }
  0x5b   : > { %v496_v0 = vsel %vm495_vm2, %v490_v7, %v494_v36  ;;  %v510_v1 = vsel %vm493_vm1, %v508_v25, %v509_v38  ;;  %1610 = vmatpush3.bf16.msra.mxu0 (!%p1519_p10), %v1776_v46  ;;  %v1805_v38 = vld [vmem:[%s2387_s1 + $0x1c8] sm:$0xff] (!%p1519_p10)   ;;  %v1818_v41 = vld [vmem:[%s2387_s1 + $0x1a0] sm:$0xff] (!%p1519_p10)   ;;  %v1824_v10 = vld [vmem:[%s2387_s1 + $0x130] sm:$0xff] (!%p1519_p10)  }
  0x5c   : > { %v498_v2 = vsel %vm497_vm3, %v490_v7, %v496_v0  ;;  %v502_v3 = vsel %vm491_vm0, %v501_v37, %v435_v8  ;;  %v511_v4 = vsel %vm495_vm2, %v508_v25, %v510_v1  ;;  %525 = sbr.rel (%p1519_p10) target bundleno = 396 (0x18c), region = 63  ;;  %1611 = vmatprep.subr.bf16.mxu0 (!%p1519_p10), %v1779_v61  ;;  %v1807_v0 = vld [vmem:[%s2387_s1 + $0x150] sm:$0xff] (!%p1519_p10)   ;;  %v1806_v1 = vld [vmem:[%s2387_s1 + $0x188] sm:$0xff] (!%p1519_p10)   ;;  %v1827_v45 = vld [vmem:[%s2387_s1 + $0x178] sm:$0xff] (!%p1519_p10)  }
  0x5d   : > { %v503_v14 = vsel %vm493_vm1, %v501_v37, %v502_v3  ;;  %v512_v18 = vsel %vm497_vm3, %v508_v25, %v511_v4  ;;  %v516_v19 = vadd.f32 %v498_v2, %v226_v35  ;;  %1634 = vmatpush3.bf16.msra.mxu1 (!%p1519_p10), %v1782_v49  ;;  %v1800_v25 = vld [vmem:[%s2387_s1 + $0x100] sm:$0xff] (!%p1519_p10)   ;;  %v1803_v35 = vld [vmem:[%s2387_s1 + $0x148] sm:$0xff] (!%p1519_p10)   ;;  %v1809_v2 = vld [vmem:[%s2387_s1 + $0x1d0] sm:$0xff] (!%p1519_p10)  }
  0x5e   : > { %v504_v20 = vsel %vm495_vm2, %v501_v37, %v503_v14  ;;  %v518_v23 = vadd.f32 %v512_v18, %v228_v39  ;;  %1635 = vmatprep.subr.bf16.mxu1 (!%p1519_p10), %v1785_v21  ;;  %v1804_v39 = vld [vmem:[%s2387_s1 + $0x108] sm:$0xff] (!%p1519_p10)   ;;  %v1808_v3 = vld [vmem:[%s2387_s1 + $0x110] sm:$0xff] (!%p1519_p10)   ;;  %v1811_v4 = vld [vmem:[%s2387_s1 + $0x158] sm:$0xff] (!%p1519_p10)  }
  0x5f   : > { %v505_v24 = vsel %vm497_vm3, %v501_v37, %v504_v20  ;;  %519 = vst [vmem:[#allocation2] sm:$0xff] %v516_v19  ;;  %1612 = vmatpush3.bf16.msra.mxu0 (!%p1519_p10), %v1780_v13  ;;  %v1802_v37 = vld [vmem:[%s2387_s1 + $0x180] sm:$0xff] (!%p1519_p10)   ;;  %v1813_v14 = vld [vmem:[%s2387_s1 + $0x1d8] sm:$0xff] (!%p1519_p10)   ;;  %v1820_v42 = vld [vmem:[%s2387_s1 + $0x128] sm:$0xff] (!%p1519_p10)  }
  0x60   : > { %v517_v40 = vadd.f32 %v505_v24, %v227_v5  ;;  %521 = vst [vmem:[#allocation2 + $0x10] sm:$0xf] %v518_v23  ;;  %1613 = vmatprep.subr.bf16.mxu0 (!%p1519_p10), %v1783_v50  ;;  %v1810_v5 = vld [vmem:[%s2387_s1 + $0x190] sm:$0xff] (!%p1519_p10)   ;;  %v1812_v18 = vld [vmem:[%s2387_s1 + $0x118] sm:$0xff] (!%p1519_p10)   ;;  %v1815_v19 = vld [vmem:[%s2387_s1 + $0x160] sm:$0xff] (!%p1519_p10)  }
  0x61   : > { %1636 = vmatpush3.bf16.msra.mxu1 (!%p1519_p10), %v1786_v22  ;;  %v1814_v20 = vld [vmem:[%s2387_s1 + $0x198] sm:$0xff] (!%p1519_p10)   ;;  %v1817_v23 = vld [vmem:[%s2387_s1 + $0x1e0] sm:$0xff] (!%p1519_p10)   ;;  %v1822_v43 = vld [vmem:[%s2387_s1 + $0x1a8] sm:$0xff] (!%p1519_p10)  }
  0x62   : > { %520 = vst [vmem:[#allocation2 + $0x8] sm:$0xff] %v517_v40  ;;  %1637 = vmatprep.subr.bf16.mxu1 (!%p1519_p10), %v1789_v27  ;;  %v1816_v24 = vld [vmem:[%s2387_s1 + $0x120] sm:$0xff] (!%p1519_p10)   ;;  %v1819_v40 = vld [vmem:[%s2387_s1 + $0x168] sm:$0xff] (!%p1519_p10)   ;;  %v1826_v46 = vld [vmem:[%s2387_s1 + $0x1b0] sm:$0xff] (!%p1519_p10)  }
  0x63   : > { %1614 = vmatpush3.bf16.msra.mxu0 %v1784_v26  ;;  %v1829_v47 = vld [vmem:[%s2387_s1 + $0x1f8] sm:$0xff]   ;;  %v1831_v49 = vld [vmem:[%s2387_s1 + $0x240] sm:$0xff]  }
  0x64   : > { %1615 = vmatprep.subr.bf16.mxu0 %v1787_v51  ;;  %v1828_v61 = vld [vmem:[%s2387_s1 + $0x138] sm:$0xff]   ;;  %v1832_v27 = vld [vmem:[%s2387_s1 + $0x200] sm:$0xff]  }
  0x65   : > { %1638 = vmatpush3.bf16.msra.mxu1 %v1790_v52  ;;  %v1830_v26 = vld [vmem:[%s2387_s1 + $0x1b8] sm:$0xff]  }
  0x66   : > { %1639 = vmatprep.subr.bf16.mxu1 %v1793_v54  ;;  %v526_v33 = vld [vmem:[#allocation2] sm:$0xff]  ;;  %v1834_v54 = vld [vmem:[%s2387_s1 + $0x208] sm:$0xff]  }
  0x67   : > { %1616 = vmatpush3.bf16.msra.mxu0 %v1788_v15  ;;  %v529_v57 = vmul.f32 0.0625, %v526_v33 }
  0x68   : > { %1617 = vmatprep.subr.bf16.mxu0 %v1791_v53  ;;  %v1833_v53 = vld [vmem:[%s2387_s1 + $0x248] sm:$0xff]  }
  0x69   : > { %1640 = vmatpush3.bf16.msra.mxu1 %v1794_v16  ;;  %v542_v58 = vrot.slane %v529_v57, %v2070_v60  ;;  %v535_v59 = vcombine.high %v529_v57, %v529_v57  ;;  %v527_v11 = vld [vmem:[#allocation2 + $0x8] sm:$0xff]  ;;  %v1835_v16 = vld [vmem:[%s2387_s1 + $0x250] sm:$0xff]   ;;  %v1838_v57 = vld [vmem:[%s2387_s1 + $0x218] sm:$0xff]  }
  0x6a   : > { %1641 = vmatprep.subr.bf16.mxu1 %v1797_v56  ;;  %v530_v12 = vmul.f32 0.0625, %v527_v11  ;;  %v528_v56 = vld [vmem:[#allocation2 + $0x10] sm:$0xf] }
  0x6b   : > { %1618 = vmatpush3.bf16.msra.mxu0 %v1792_v31  ;;  %v550_v63 = vcombine.high %v542_v58, %v542_v58  ;;  %v549_v6 = vrot.slane %v535_v59, %v2070_v60  ;;  %v587_v7 = vpack.c.bf16 %v542_v58, %v542_v58  ;;  %v531_v33 = vmul.f32 0.0625, %v528_v56  ;;  %v1840_v59 = vld [vmem:[%s2387_s1 + $0x220] sm:$0xff]  }
  0x6c   : > { %1619 = vmatprep.subr.bf16.mxu0 %v1795_v32  ;;  %v559_v13 = vrot.slane %v530_v12, %v2070_v60  ;;  %v552_v48 = vcombine.high %v530_v12, %v530_v12  ;;  %v1836_v32 = vld [vmem:[%s2387_s1 + $0x210] sm:$0xff]  }
  0x6d   : > { %1642 = vmatpush3.bf16.msra.mxu1 %v1798_v17  ;;  %v588_v8 = vpack.c.bf16 %v550_v63, %v550_v63  ;;  %v551_v9 = vcombine.high %v549_v6, %v549_v6  ;;  %v589_v28 = vpack.c.bf16 %v549_v6, %v549_v6  ;;  %v1839_v17 = vld [vmem:[%s2387_s1 + $0x260] sm:$0xff]   ;;  %v1842_v6 = vld [vmem:[%s2387_s1 + $0x228] sm:$0xff]  }
  0x6e   : > { %1671 = vmatprep.subr.bf16.mxu1 %v1801_v62  ;;  %v567_v50 = vcombine.high %v559_v13, %v559_v13  ;;  %v566_v21 = vrot.slane %v552_v48, %v2070_v60  ;;  %v591_v22 = vpack.c.bf16 %v559_v13, %v559_v13  ;;  %v1841_v62 = vld [vmem:[%s2387_s1 + $0x268] sm:$0xff]  }
  0x6f   : > { %1620 = vmatpush3.bf16.msra.mxu0 %v1796_v55  ;;  %1276 = vmatprep.mubr.bf16.mxu0 %v588_v8  ;;  %v590_v36 = vpack.c.bf16 %v551_v9, %v551_v9  ;;  %v1837_v55 = vld [vmem:[%s2387_s1 + $0x258] sm:$0xff]  }
  0x70   : > { %1649 = vmatprep.subr.bf16.mxu0 %v1799_v34  ;;  %v592_v51 = vpack.c.bf16 %v567_v50, %v567_v50  ;;  %v568_v15 = vcombine.high %v566_v21, %v566_v21  ;;  %v593_v52 = vpack.c.bf16 %v566_v21, %v566_v21  ;;  %v575_v34 = vrot.slane %v531_v33, %v2070_v60  ;;  %v1843_v60 = vld [vmem:[%s2387_s1 + $0x270] sm:$0xff]   ;;  %v1845_v8 = vld [vmem:[%s2387_s1 + $0x278] sm:$0xff]  }
  0x71   : > { %1316 = vmatprep.mubr.bf16.mxu1 %v590_v36  ;;  %v1846_v9 = vld [vmem:[%s2387_s1 + $0x238] sm:$0xff]  }
  0x72   : > { %1277 = vmatmul.mubr.bf16.vlgmr.msra.gmra.mrb[0].mxu0 %v587_v7  ;;  %1317 = vmatmul.mubr.bf16.vlgmr.msra.gmra.mrb[0].mxu1 %v589_v28  ;;  %v594_v31 = vpack.c.bf16 %v568_v15, %v568_v15  ;;  %v576_v58 = vcombine.high %v575_v34, %v575_v34  ;;  %v1844_v7 = vld [vmem:[%s2387_s1 + $0x230] sm:$0xff]  }
  0x73   : > { %1650 = vmatpush3.bf16.msra.mxu0 %v1800_v25  ;;  %1672 = vmatpush3.bf16.msra.mxu1 %v1802_v37  ;;  %v595_v25 = vpack.c.bf16 %v575_v34, %v575_v34 }
  0x74   : > { %1651 = vmatprep.subr.bf16.mxu0 %v1803_v35  ;;  %1673 = vmatprep.subr.bf16.mxu1 %v1805_v38  ;;  %v596_v63 = vpack.c.bf16 %v576_v58, %v576_v58  ;;  %v1520_v35 = vld [vmem:[%s2388_s2] ss:$0 sm:$0xff] }
  0x75   : > { %1356 = vmatprep.mubr.bf16.mxu0 %v592_v51  ;;  %1396 = vmatprep.mubr.bf16.mxu1 %v594_v31 }
  0x77   : > { %1652 = vmatpush3.bf16.msra.mxu0 %v1804_v39  ;;  %1674 = vmatpush3.bf16.msra.mxu1 %v1806_v1 }
  0x78   : > { %1653 = vmatprep.subr.bf16.mxu0 %v1807_v0  ;;  %1675 = vmatprep.subr.bf16.mxu1 %v1809_v2 }
  0x7b   : > { %1654 = vmatpush3.bf16.msra.mxu0 %v1808_v3  ;;  %1676 = vmatpush3.bf16.msra.mxu1 %v1810_v5 }
  0x7c   : > { %1655 = vmatprep.subr.bf16.mxu0 %v1811_v4  ;;  %1677 = vmatprep.subr.bf16.mxu1 %v1813_v14 }
  0x7f   : > { %1656 = vmatpush3.bf16.msra.mxu0 %v1812_v18  ;;  %1678 = vmatpush3.bf16.msra.mxu1 %v1814_v20 }
  0x80   : > { %1657 = vmatprep.subr.bf16.mxu0 %v1815_v19  ;;  %1679 = vmatprep.subr.bf16.mxu1 %v1817_v23 }
  0x83   : > { %1658 = vmatpush3.bf16.msra.mxu0 %v1816_v24  ;;  %1680 = vmatpush3.bf16.msra.mxu1 %v1818_v41 }
  0x84   : > { %1659 = vmatprep.subr.bf16.mxu0 %v1819_v40  ;;  %1681 = vmatprep.subr.bf16.mxu1 %v1821_v29 }
  0x87   : > { %1660 = vmatpush3.bf16.msra.mxu0 %v1820_v42  ;;  %1682 = vmatpush3.bf16.msra.mxu1 %v1822_v43 }
  0x88   : > { %1661 = vmatprep.subr.bf16.mxu0 %v1823_v30  ;;  %1683 = vmatprep.subr.bf16.mxu1 %v1825_v44 }
  0x8b   : > { %1662 = vmatpush3.bf16.msra.mxu0 %v1824_v10  ;;  %1684 = vmatpush3.bf16.msra.mxu1 %v1826_v46 }
  0x8c   : > { %1663 = vmatprep.subr.bf16.mxu0 %v1827_v45  ;;  %1685 = vmatprep.subr.bf16.mxu1 %v1829_v47 }
  0x8f   : > { %1664 = vmatpush3.bf16.msra.mxu0 %v1828_v61  ;;  %1686 = vmatpush3.bf16.msra.mxu1 %v1830_v26 }
  0x90   : > { %1693 = vmatprep.subr.bf16.mxu0 %v1831_v49 }
  0x92   : > { %1357 = vmatmul.mubr.bf16.vlgmr.msra.gmra.mrb[4].mxu0 %v591_v22  ;;  %1397 = vmatmul.mubr.bf16.vlgmr.msra.gmra.mrb[4].mxu1 %v593_v52 }
  0x93   : > { %1694 = vmatpush3.bf16.msra.mxu0 %v1832_v27  ;;  %1436 = vmatprep.mubr.bf16.mxu0 %v596_v63 }
  0x94   : > { %1695 = vmatprep.subr.bf16.mxu0 %v1833_v53 }
  0x97   : > { %1696 = vmatpush3.bf16.msra.mxu0 %v1834_v54 }
  0x98   : > { %1697 = vmatprep.subr.bf16.mxu0 %v1835_v16 }
  0x9b   : > { %1698 = vmatpush3.bf16.msra.mxu0 %v1836_v32 }
  0x9c   : > { %1699 = vmatprep.subr.bf16.mxu0 %v1837_v55 }
  0x9f   : > { %1700 = vmatpush3.bf16.msra.mxu0 %v1838_v57 }
  0xa0   : > { %1701 = vmatprep.subr.bf16.mxu0 %v1839_v17 }
  0xa3   : > { %1702 = vmatpush3.bf16.msra.mxu0 %v1840_v59 }
  0xa4   : > { %1703 = vmatprep.subr.bf16.mxu0 %v1841_v62 }
  0xa7   : > { %1704 = vmatpush3.bf16.msra.mxu0 %v1842_v6 }
  0xa8   : > { %1705 = vmatprep.subr.bf16.mxu0 %v1843_v60 }
  0xab   : > { %1706 = vmatpush3.bf16.msra.mxu0 %v1844_v7 }
  0xac   : > { %1707 = vmatprep.subr.bf16.mxu0 %v1845_v8 }
  0xaf   : > { %1708 = vmatpush3.bf16.msra.mxu0 %v1846_v9 }
  0xb2   : > { %1437 = vmatmul.mubr.bf16.vlgmr.msra.gmra.mrb[8].mxu0 %v595_v25 }
 0x145   : > { %v1621_v28 = vpop.f32.mrb[0].mxu0  ;;  %v1643_v39 = vpop.f32.mrb[0].mxu1 }
 0x146   : > { %v1622_v36 = vpop.f32.mrb[1].mxu0  ;;  %v1644_v1 = vpop.f32.mrb[1].mxu1 }
 0x147   : > { %v1623_v37 = vadd.f32 %v1622_v36, %v1621_v28  ;;  %v1624_v38 = vpop.f32.mrb[2].mxu0  ;;  %v1645_v3 = vadd.f32 %v1644_v1, %v1643_v39  ;;  %v1646_v4 = vpop.f32.mrb[2].mxu1 }
 0x148   : > { %v1625_v0 = vpop.f32.mrb[3].mxu0  ;;  %v1647_v5 = vpop.f32.mrb[3].mxu1 }
 0x149   : > { %v1279_v2 = vadd.f32 %v1623_v37, %v1520_v35 }
 0x14b   : > { %v1319_v14 = vadd.f32 %v1645_v3, %v1279_v2 }
 0x165   : > { %v1665_v18 = vpop.f32.mrb[4].mxu0  ;;  %v1687_v24 = vpop.f32.mrb[4].mxu1 }
 0x166   : > { %v1666_v19 = vpop.f32.mrb[5].mxu0  ;;  %v1688_v41 = vpop.f32.mrb[5].mxu1 }
 0x167   : > { %v1667_v20 = vadd.f32 %v1666_v19, %v1665_v18  ;;  %v1668_v23 = vpop.f32.mrb[6].mxu0  ;;  %v1689_v42 = vadd.f32 %v1688_v41, %v1687_v24  ;;  %v1690_v30 = vpop.f32.mrb[6].mxu1 }
 0x168   : > { %v1669_v40 = vpop.f32.mrb[7].mxu0  ;;  %v1691_v43 = vpop.f32.mrb[7].mxu1 }
 0x169   : > { %v1359_v29 = vadd.f32 %v1667_v20, %v1319_v14 }
 0x16b   : > { %v1399_v44 = vadd.f32 %v1689_v42, %v1359_v29 }
 0x185   : > { %v1709_v10 = vpop.f32.mrb[8].mxu0 }
 0x186   : > { %v1710_v45 = vpop.f32.mrb[9].mxu0 }
 0x187   : > { %v1711_v11 = vadd.f32 %v1710_v45, %v1709_v10  ;;  %v1712_v46 = vpop.f32.mrb[10].mxu0 }
 0x188   : > { %v1713_v12 = vpop.f32.mrb[11].mxu0 }
 0x189   : > { %v1439_v47 = vadd.f32 %v1711_v11, %v1399_v44 }
 0x18b   : > { %1444 = vst [vmem:[#allocation4] sm:$0x3] %v1439_v47 }
 0x18c PF: > { %p2345_p11 = scmp.eq.s32.totalorder %s1513_s17, 1  ;;  %s1919_s27 = smov [#allocation4]  }
 0x18d   : > { %s1454_s28 = sshll.u32 %s1919_s27, 4  ;;  %s1455_s28 = int_to_ptr.vmem [resolvable:$true] %s1454_s28 }
 0x18e   : > { %s1847_s29 = scalar_lea.vmem %s1455_s28, 32  ;;  %p1854_p1 = scmp.lt.s32.totalorder %s1455_s28, %s1455_s28 }
 0x18f   : > { %p1848_p12 = scmp.ne.s32.totalorder %s1455_s28, %s1847_s29  ;;  %p1855_p2 = scmp.lt.s32.totalorder %s1847_s29, %s1847_s29 }
 0x191   : > { %p1849_p13 = pnand %p1848_p12, %p2345_p11  ;;  %p1856_p3 = por %p1855_p2, %p1854_p1 }
 0x193   : > { %p1850_p0 = pneg %p1849_p13 }
 0x195   : > { %p1857_p4 = pnand %p1856_p3, %p1850_p0 }
 0x197   : > { %1860 = shalt.err (!%p1857_p4)
}
 0x198   : > { %s1861_s17 = scalar_lea.hbm %s2389_s3, 32 }
 0x199   : > { %p1862_p5 = scmp.ne.s32.totalorder %s2389_s3, %s1861_s17  ;;  %p1867_p8 = scmp.lt.u32.totalorder %s1861_s17, %s2389_s3 }
 0x19b   : > { %p1863_p6 = pnand %p1862_p5, %p2345_p11 }
 0x19d   : > { %p1864_p7 = pneg %p1863_p6 }
 0x19f   : > { %p1869_p9 = pnand %p1867_p8, %p1864_p7 }
 0x1a1   : > { %1872 = shalt.err (!%p1869_p9)
}
 0x1a2   : > { %1719 = dma.vmem_to_hbm [thread:$0]  (%p2345_p11), %s1455_s28, 32, %s2389_s3, [#allocation5]  }
 0x1a3   : > { %1894 = dma.done.wait (%p2345_p11), [#allocation5], 32  }
 0x1a4   : > { %1896 = vsyncadd (%p2345_p11), [#allocation5], 4294967264 }
 0x1a5 PF: > { %s14_s16 = sadd.s32 1, %s1915_s16   ;;  %s2391_s12 = smov %s1903_s13 }
 0x1a6   : > { %p11_p10 = scmp.ge.s32.totalorder %s14_s16, 4   ;;  %s2392_s13 = smov %s1976_s21 }
 0x1a7   : > { %s2393_s14 = smov %s1911_s15  ;;  %s2394_s15 = smov %s2396_s18 }
 0x1a8   :  { %13 = sbr.rel (!%p11_p10) target bundleno = 3 (0x3), region = 97 }
 0x1af   :  { %1467 = vsyncpa [#allocation5], 1 }
 0x1b0   :  { %1469 = vsyncpa [#allocation5 + $0x1], 1 }

</bundles_post_ra>
